<compile_context>
chip_gen: v6e
topology: v6e:2x2x1
jax: 0.10.0
libtpu: 0.0.40
codegen_flags: <defaults>
</compile_context>

<pallas_src>
import functools

import jax
import jax.numpy as jnp
from jax.experimental import pallas as pl
from jax.experimental.pallas import tpu as pltpu


def _round_up(x, m):
    return (x + m - 1) // m * m


NEG_BIG = -1e30  # finite "masked logit" value; avoids exp(-inf - (-inf)) = NaN hazards


# ---------------------------------------------------------------------------
# Fused LoRA lm_head + optional online cross-entropy.
#   grid = (M tiles, Dout tiles, Din tiles)   (Din = reduction, fastest axis)
#   x block = full K panel (tm, Din_p), resident across the whole Dout x Din sweep.
#   logits tile = acc + bias(+mask) + xa @ (scaling*B)^T   (emitted at k == last)
#   CE: running max / running sum / picked-logit scratch carried across Dout tiles;
#       per-row masked nll + valid count emitted at the last Dout tile.
# ---------------------------------------------------------------------------
def _lora_head_kernel(*refs, tile_k, tile_n, ignore_index, compute_loss, write_logits):
    x_ref, wt_ref, b_ref, at_ref, bt_ref = refs[:5]
    idx = 5
    if compute_loss:
        tgt_ref = refs[idx]
        idx += 1
    if write_logits:
        out_ref = refs[idx]
        idx += 1
    if compute_loss:
        nll_ref, cnt_ref = refs[idx], refs[idx + 1]
        idx += 2
    acc_ref, xa_ref = refs[idx], refs[idx + 1]
    idx += 2
    if compute_loss:
        m_ref, l_ref, pick_ref = refs[idx], refs[idx + 1], refs[idx + 2]

    j = pl.program_id(1)          # Dout tile
    k = pl.program_id(2)          # Din (reduction) tile

    @pl.when(k == 0)
    def _init():
        acc_ref[...] = jnp.zeros_like(acc_ref)
        # Rank-r LoRA "down" projection on the resident x K-panel. Negligible FLOPs vs the
        # main matmul; fusing it here removes a second full HBM read of x, the HBM
        # round-trip of xa and an extra kernel launch.
        xa_ref[...] = jnp.dot(x_ref[...], at_ref[...],
                              preferred_element_type=jnp.float32)

    kk = pl.multiple_of(k * tile_k, tile_k)
    acc_ref[...] += jnp.dot(x_ref[:, pl.ds(kk, tile_k)], wt_ref[...],
                            preferred_element_type=jnp.float32)

    @pl.when(k == pl.num_programs(2) - 1)
    def _finalize():
        # LoRA "up": (tm, r) @ (r, tn); `scaling` is pre-folded into bt at prep time.
        lora = jnp.dot(xa_ref[...], bt_ref[...], preferred_element_type=jnp.float32)
        # bias carries the vocab-padding mask (NEG_BIG on padded columns), so no per-tile
        # iota/compare/where is needed for the softmax masking.
        logits = acc_ref[...] + b_ref[...] + lora
        if write_logits:
            out_ref[...] = logits.astype(out_ref.dtype)

        if compute_loss:
            @pl.when(j == 0)
            def _():
                m_ref[...] = jnp.full_like(m_ref, NEG_BIG)
                l_ref[...] = jnp.zeros_like(l_ref)
                pick_ref[...] = jnp.zeros_like(pick_ref)

            tgt = tgt_ref[...]                                          # (tm, 1) int32
            col = jax.lax.broadcasted_iota(jnp.int32, logits.shape, 1)  # local column ids

            m_old = m_ref[...]
            m_new = jnp.maximum(m_old, jnp.max(logits, axis=-1, keepdims=True))
            corr = jnp.exp(m_old - m_new)
            l_ref[...] = corr * l_ref[...] + jnp.sum(jnp.exp(logits - m_new),
                                                     axis=-1, keepdims=True)
            # Local one-hot: compare local column index against (tgt - j*tile_n).
            pick_ref[...] += jnp.sum(jnp.where(col == tgt - j * tile_n, logits, 0.0),
                                     axis=-1, keepdims=True)
            m_ref[...] = m_new

            @pl.when(j == pl.num_programs(1) - 1)
            def _():
                valid = tgt != ignore_index
                nll = m_ref[...] + jnp.log(l_ref[...]) - pick_ref[...]
                nll_ref[...] = jnp.where(valid, nll, 0.0)
                cnt_ref[...] = valid.astype(jnp.float32)


# ---------------------------------------------------------------------------
# One-time parameter preparation: transpose + pad + (optionally) cast to bf16.
#  * scaling is folded into B^T,
#  * vocab-padding mask baked into the bias pad (NEG_BIG).
# ---------------------------------------------------------------------------
def prepare_lora_head_params(w, b, lora_A, lora_B, scaling, *,
                             tile_n=1024, tile_k=512, compute_dtype=None):
    Dout, Din = w.shape
    r = lora_A.shape[0]
    compute_dtype = compute_dtype or w.dtype

    tn = min(tile_n, _round_up(Dout, 128))
    tk = min(tile_k, _round_up(Din, 128))
    dout_p = _round_up(Dout, tn)
    din_p = _round_up(Din, tk)

    w_p = jnp.pad(w, ((0, dout_p - Dout), (0, din_p - Din)))
    a_p = jnp.pad(lora_A, ((0, 0), (0, din_p - Din)))
    b2_p = jnp.pad(lora_B, ((0, dout_p - Dout), (0, 0)))
    bias_p = jnp.pad(b.astype(jnp.float32), (0, dout_p - Dout),
                     constant_values=NEG_BIG).reshape(1, dout_p)

    return dict(
        wt=w_p.T.astype(compute_dtype),                       # (Din_p, Dout_p)
        bias=bias_p,                                          # (1, Dout_p) f32, mask baked in
        at=a_p.T.astype(compute_dtype),                       # (Din_p, r)   tiny, VMEM-resident
        bt=(float(scaling) * b2_p).T.astype(jnp.float32),     # (r, Dout_p)  scaling folded in
        compute_dtype=compute_dtype,
        dims=dict(Dout=Dout, Din=Din, r=r, dout_p=dout_p, din_p=din_p, tn=tn, tk=tk),
    )


# ---------------------------------------------------------------------------
# LoRA lm_head forward:  logits (and fused CE loss if targets is given).
# Per-generation tuning notes:
#   v5e:  TM,TN >= 512 (needs ~240 flop/byte); raise vmem_limit past the 16 MiB default.
#   v6e:  TM~1024, TN~1536-2048, TK 512-1024 with vmem_limit ~48-64 MiB.
#   v7x:  TM=TN=1024, TK=512 is enough (~310 flop/byte threshold); keep n_m >= 2 so both
#         TensorCores get work (only the i axis is "parallel" on the loss path).
# Defaults below (512/1024/512, 48 MiB) are a safe compromise that fits every generation.
# ---------------------------------------------------------------------------
def lora_head_forward(prep, x2d, targets=None, *, tile_m=512, ignore_index=3,
                      out_dtype=None, return_logits=True,
                      vmem_limit_bytes=48 * 1024 * 1024):
    d = prep["dims"]
    M, Din = x2d.shape
    assert Din == d["Din"]
    cd = prep["compute_dtype"]
    out_dtype = out_dtype or cd
    compute_loss = targets is not None
    assert return_logits or compute_loss, "nothing to compute"

    tn, tk = d["tn"], d["tk"]
    dout_p, din_p, r = d["dout_p"], d["din_p"], d["r"]

    tm = min(tile_m, _round_up(M, 8))
    m_p = _round_up(M, tm)
    # TODO(synk): fuse this pad+cast into the activation producer for a zero-copy hand-off;
    # it is minor once the main kernel is compute-bound.
    x_p = jnp.pad(x2d, ((0, m_p - M), (0, din_p - Din))).astype(cd)

    n_m, n_n, n_k = m_p // tm, dout_p // tn, din_p // tk

    kernel = functools.partial(
        _lora_head_kernel, tile_k=tk, tile_n=tn, ignore_index=ignore_index,
        compute_loss=compute_loss, write_logits=return_logits)

    # x K-panel: block index depends only on i -> kept in VMEM across the whole
    # Dout x Din sweep of an M tile; x is read from HBM exactly once.
    in_specs = [
        pl.BlockSpec((tm, din_p), lambda i, j, k: (i, 0)),   # x (K-resident panel)
        pl.BlockSpec((tk, tn), lambda i, j, k: (k, j)),      # W^T (streamed)
        pl.BlockSpec((1, tn), lambda i, j, k: (0, j)),       # bias (+vocab-pad mask)
        pl.BlockSpec((din_p, r), lambda i, j, k: (0, 0)),    # A^T (tiny, resident)
        pl.BlockSpec((r, tn), lambda i, j, k: (0, j)),       # scaling * B^T
    ]
    operands = [x_p, prep["wt"], prep["bias"], prep["at"], prep["bt"]]

    out_shapes, out_specs = [], []
    if return_logits:
        out_shapes.append(jax.ShapeDtypeStruct((m_p, dout_p), out_dtype))
        out_specs.append(pl.BlockSpec((tm, tn), lambda i, j, k: (i, j)))
    scratch = [pltpu.VMEM((tm, tn), jnp.float32),            # acc
               pltpu.VMEM((tm, r), jnp.float32)]             # xa = x @ A^T
    sem = ("parallel", "parallel", "arbitrary")

    if compute_loss:
        tgt_p = jnp.pad(targets.reshape(-1).astype(jnp.int32), (0, m_p - M),
                        constant_values=ignore_index).reshape(m_p, 1)
        in_specs.append(pl.BlockSpec((tm, 1), lambda i, j, k: (i, 0)))
        operands.append(tgt_p)
        out_shapes += [jax.ShapeDtypeStruct((m_p, 1), jnp.float32),   # masked per-row nll
                       jax.ShapeDtypeStruct((m_p, 1), jnp.float32)]   # per-row valid count
        out_specs += [pl.BlockSpec((tm, 1), lambda i, j, k: (i, 0)),
                      pl.BlockSpec((tm, 1), lambda i, j, k: (i, 0))]
        scratch += [pltpu.VMEM((tm, 1), jnp.float32)] * 3             # m, l, picked
        # CE running stats carry across the Dout axis -> that axis must stay serial.
        sem = ("parallel", "arbitrary", "arbitrary")

    results = pl.pallas_call(
        kernel,
        out_shape=tuple(out_shapes),
        grid=(n_m, n_n, n_k),
        in_specs=in_specs,
        out_specs=tuple(out_specs),
        scratch_shapes=scratch,
        compiler_params=pltpu.CompilerParams(
            dimension_semantics=sem, vmem_limit_bytes=vmem_limit_bytes),
    )(*operands)

    logits, loss, idx = None, None, 0
    if return_logits:
        logits = results[idx][:M, :d["Dout"]]
        idx += 1
    if compute_loss:
        nll_rows, valid_rows = results[idx], results[idx + 1]
        # Matches torch mean-reduction CE: NaN if no valid (non-ignored) target.
        loss = jnp.sum(nll_rows) / jnp.sum(valid_rows)
    return logits, loss


# ---------------------------------------------------------------------------
# ModelWithLoRA forward (glue in plain JAX; hot matmuls / CE reduction in Pallas)
# ---------------------------------------------------------------------------
def model_with_lora_forward(params, prep, tokens, targets=None, *, tile_m=512):
    B, S = tokens.shape
    H = params["embed"].shape[1]
    # TODO(synk): MiniR1 base transformer not provided; modeled as embedding -> lm_head.
    x2d = jnp.take(params["embed"], tokens, axis=0).reshape(B * S, H)  # gather glue
    logits2d, loss = lora_head_forward(prep, x2d, targets, tile_m=tile_m)
    return logits2d.reshape(B, S, -1), loss


if __name__ == "__main__":
    # Small shapes that still exercise a real multi-tile grid: n_m=2, n_n=3, n_k=2,
    # M padding (seq=7 -> 2 padded rows) and vocab padding (320 -> 384).
    batch, seq, hidden, vocab, rank = 2, 7, 256, 320, 8
    alpha = 16.0  # LoRALayer: self.scaling = alpha

    key = jax.random.PRNGKey(0)
    k_emb, k_w, k_b, k_a, k_bb, k_tok, k_tgt = jax.random.split(key, 7)

    bound_A = 1.0 / jnp.sqrt(hidden)  # kaiming_uniform(a=sqrt(5)) bound = 1/sqrt(fan_in)
    params = {
        "embed": jax.random.normal(k_emb, (vocab, hidden), jnp.float32) * 0.5,
        "w": jax.random.normal(k_w, (vocab, hidden), jnp.float32) * (1.0 / jnp.sqrt(hidden)),
        "b": jax.random.normal(k_b, (vocab,), jnp.float32) * 0.1,
        "lora_A": jax.random.uniform(k_a, (rank, hidden), jnp.float32,
                                     minval=-bound_A, maxval=bound_A),
        # PyTorch inits lora_B to zeros; small random values here so the LoRA branch
        # is exercised numerically.
        "lora_B": jax.random.normal(k_bb, (vocab, rank), jnp.float32) * 0.05,
    }

    tokens = jax.random.randint(k_tok, (batch, seq), 0, vocab, dtype=jnp.int32)
    targets = jax.random.randint(k_tgt, (batch, seq), 0, vocab, dtype=jnp.int32)
    targets = targets.at[0, 0].set(3)  # exercise ignore_index=3

    # One-time weight prep (transpose + pad + fold scaling + bake vocab mask).
    # Small tiles here so the tiny demo still runs a (2, 3, 2) grid.
    prep = prepare_lora_head_params(params["w"], params["b"],
                                    params["lora_A"], params["lora_B"], alpha,
                                    tile_n=128, tile_k=128)

    @jax.jit
    def fwd(p, tok, tgt):
        return model_with_lora_forward(p, prep, tok, tgt, tile_m=8)

    logits, loss = fwd(params, tokens, targets)
    jax.block_until_ready((logits, loss))

    # Inference path (targets=None) exercises the no-CE kernel variant.
    logits_nl, loss_nl = model_with_lora_forward(params, prep, tokens, None, tile_m=8)
    jax.block_until_ready(logits_nl)
    assert loss_nl is None

    # --- pure-JAX reference check ---
    x_ref = jnp.take(params["embed"], tokens, axis=0).reshape(batch * seq, hidden)
    base_ref = x_ref @ params["w"].T + params["b"]
    lora_ref = alpha * (x_ref @ params["lora_A"].T @ params["lora_B"].T)
    logits_ref = (base_ref + lora_ref).reshape(batch, seq, vocab)

    t = targets.reshape(-1)
    l2 = logits_ref.reshape(-1, vocab)
    lse = jax.scipy.special.logsumexp(l2, axis=-1)
    nll = lse - jnp.take_along_axis(l2, t[:, None], axis=-1)[:, 0]
    valid = t != 3
    loss_ref = jnp.sum(jnp.where(valid, nll, 0.0)) / jnp.sum(valid)

    assert logits.shape == (batch, seq, vocab)
    assert jnp.allclose(logits, logits_ref, atol=1e-2, rtol=1e-2), "logits mismatch"
    assert jnp.allclose(logits_nl, logits_ref, atol=1e-2, rtol=1e-2), "logits (no-loss) mismatch"
    assert jnp.allclose(loss, loss_ref, atol=2e-2, rtol=2e-2), "loss mismatch"

    # Loss-only path (training step without logits writeback).
    _, loss_only = lora_head_forward(prep, x_ref, t, tile_m=8, return_logits=False)
    jax.block_until_ready(loss_only)
    assert jnp.allclose(loss_only, loss_ref, atol=2e-2, rtol=2e-2), "loss-only mismatch"

    # bf16 MXU path (f32 accumulation, bf16 logits store) — loose-tolerance sanity check.
    prep_bf16 = prepare_lora_head_params(params["w"], params["b"],
                                         params["lora_A"], params["lora_B"], alpha,
                                         tile_n=128, tile_k=128,
                                         compute_dtype=jnp.bfloat16)
    logits_bf, loss_bf = lora_head_forward(prep_bf16, x_ref, t, tile_m=8)
    jax.block_until_ready((logits_bf, loss_bf))
    assert jnp.allclose(logits_bf.astype(jnp.float32), l2, atol=5e-2, rtol=5e-2), \
        "bf16 logits mismatch"
    assert jnp.allclose(loss_bf, loss_ref, atol=5e-2, rtol=5e-2), "bf16 loss mismatch"

    print("KERNEL_OK")
</pallas_src>

<mosaic_0001>
module attributes {stable_mosaic.version = 11 : i64} {
  func.func @_lora_head_kernel(%arg0: i32, %arg1: i32, %arg2: i32, %arg3: memref<8x256xf32, #tpu.memory_space<vmem>>, %arg4: memref<128x128xf32, #tpu.memory_space<vmem>>, %arg5: memref<1x128xf32, #tpu.memory_space<vmem>>, %arg6: memref<256x8xf32, #tpu.memory_space<vmem>>, %arg7: memref<8x128xf32, #tpu.memory_space<vmem>>, %arg8: memref<8x1xi32, #tpu.memory_space<vmem>>, %arg9: memref<8x128xf32, #tpu.memory_space<vmem>>, %arg10: memref<8x1xf32, #tpu.memory_space<vmem>>, %arg11: memref<8x1xf32, #tpu.memory_space<vmem>>, %arg12: memref<8x128xf32, #tpu.memory_space<vmem>>, %arg13: memref<8x8xf32, #tpu.memory_space<vmem>>, %arg14: memref<8x1xf32, #tpu.memory_space<vmem>>, %arg15: memref<8x1xf32, #tpu.memory_space<vmem>>, %arg16: memref<8x1xf32, #tpu.memory_space<vmem>>) attributes {dimension_semantics = [#tpu.dimension_semantics<parallel>, #tpu.dimension_semantics<arbitrary>, #tpu.dimension_semantics<arbitrary>], iteration_bounds = array<i64: 2, 3, 2>, scalar_prefetch = 0 : i64, scratch_operands = 5 : i64, tpu.core_type = #tpu.core_type<tc>, window_params = [{transform_indices = @transform_0, window_bounds = array<i64: 8, 256>}, {transform_indices = @transform_1, window_bounds = array<i64: 128, 128>}, {transform_indices = @transform_2, window_bounds = array<i64: 1, 128>}, {pipeline_mode = #tpu.pipeline_mode<synchronous>, transform_indices = @transform_3, window_bounds = array<i64: 256, 8>}, {transform_indices = @transform_4, window_bounds = array<i64: 8, 128>}, {transform_indices = @transform_5, window_bounds = array<i64: 8, 1>}, {transform_indices = @transform_6, window_bounds = array<i64: 8, 128>}, {transform_indices = @transform_7, window_bounds = array<i64: 8, 1>}, {transform_indices = @transform_8, window_bounds = array<i64: 8, 1>}]} {
    %c0_i32 = arith.constant 0 : i32
    %0 = arith.cmpi eq, %arg2, %c0_i32 : i32
    %1 = arith.extui %0 : i1 to i32
    %c0_i32_0 = arith.constant 0 : i32
    %2 = arith.cmpi ne, %1, %c0_i32_0 : i32
    scf.if %2 {
      %cst_8 = arith.constant 0.000000e+00 : f32
      %15 = vector.broadcast %cst_8 : f32 to vector<8x128xf32>
      %c0_9 = arith.constant 0 : index
      %c0_10 = arith.constant 0 : index
      %16 = vector.load %arg12[%c0_9, %c0_10] : memref<8x128xf32, #tpu.memory_space<vmem>>, vector<8x128xf32>
      tpu.vector_store %arg12[%c0_9, %c0_10], %15 {strides = array<i32>} : memref<8x128xf32, #tpu.memory_space<vmem>>, vector<8x128xf32>,
      %c0_11 = arith.constant 0 : index
      %c0_12 = arith.constant 0 : index
      %17 = vector.load %arg3[%c0_11, %c0_12] : memref<8x256xf32, #tpu.memory_space<vmem>>, vector<8x256xf32>
      %c0_13 = arith.constant 0 : index
      %c0_14 = arith.constant 0 : index
      %18 = vector.load %arg6[%c0_13, %c0_14] : memref<256x8xf32, #tpu.memory_space<vmem>>, vector<256x8xf32>
      %cst_15 = arith.constant dense<0.000000e+00> : vector<8x8xf32>
      %19 = tpu.matmul %17, %18, %cst_15 {dimension_numbers = #tpu.dot_dimension_numbers<[1], [0], [0], [1], [0, 0, 1, 1], [], []>} : vector<8x256xf32>, vector<256x8xf32>, vector<8x8xf32> -> vector<8x8xf32>
      %c0_16 = arith.constant 0 : index
      %c0_17 = arith.constant 0 : index
      %20 = vector.load %arg13[%c0_16, %c0_17] : memref<8x8xf32, #tpu.memory_space<vmem>>, vector<8x8xf32>
      tpu.vector_store %arg13[%c0_16, %c0_17], %19 {strides = array<i32>} : memref<8x8xf32, #tpu.memory_space<vmem>>, vector<8x8xf32>,
    } else {
    }
    %c128_i32 = arith.constant 128 : i32
    %3 = arith.muli %arg2, %c128_i32 : i32
    %4 = tpu.assume_multiple %3, 128 : i32
    %c0 = arith.constant 0 : index
    %c0_1 = arith.constant 0 : index
    %5 = vector.load %arg12[%c0, %c0_1] : memref<8x128xf32, #tpu.memory_space<vmem>>, vector<8x128xf32>
    %c0_2 = arith.constant 0 : index
    %6 = arith.index_cast %4 : i32 to index
    %7 = vector.load %arg3[%c0_2, %6] : memref<8x256xf32, #tpu.memory_space<vmem>>, vector<8x128xf32>
    %c0_3 = arith.constant 0 : index
    %c0_4 = arith.constant 0 : index
    %8 = vector.load %arg4[%c0_3, %c0_4] : memref<128x128xf32, #tpu.memory_space<vmem>>, vector<128x128xf32>
    %cst = arith.constant dense<0.000000e+00> : vector<8x128xf32>
    %9 = tpu.matmul %7, %8, %cst {dimension_numbers = #tpu.dot_dimension_numbers<[1], [0], [0], [1], [0, 0, 1, 1], [], []>} : vector<8x128xf32>, vector<128x128xf32>, vector<8x128xf32> -> vector<8x128xf32>
    %10 = arith.addf %5, %9 : vector<8x128xf32>
    %c0_5 = arith.constant 0 : index
    %c0_6 = arith.constant 0 : index
    %11 = vector.load %arg12[%c0_5, %c0_6] : memref<8x128xf32, #tpu.memory_space<vmem>>, vector<8x128xf32>
    tpu.vector_store %arg12[%c0_5, %c0_6], %10 {strides = array<i32>} : memref<8x128xf32, #tpu.memory_space<vmem>>, vector<8x128xf32>,
    %c1_i32 = arith.constant 1 : i32
    %12 = arith.cmpi eq, %arg2, %c1_i32 : i32
    %13 = arith.extui %12 : i1 to i32
    %c0_i32_7 = arith.constant 0 : i32
    %14 = arith.cmpi ne, %13, %c0_i32_7 : i32
    scf.if %14 {
      %c0_8 = arith.constant 0 : index
      %c0_9 = arith.constant 0 : index
      %15 = vector.load %arg13[%c0_8, %c0_9] : memref<8x8xf32, #tpu.memory_space<vmem>>, vector<8x8xf32>
      %c0_10 = arith.constant 0 : index
      %c0_11 = arith.constant 0 : index
      %16 = vector.load %arg7[%c0_10, %c0_11] : memref<8x128xf32, #tpu.memory_space<vmem>>, vector<8x128xf32>
      %cst_12 = arith.constant dense<0.000000e+00> : vector<8x128xf32>
      %17 = tpu.matmul %15, %16, %cst_12 {dimension_numbers = #tpu.dot_dimension_numbers<[1], [0], [0], [1], [0, 0, 1, 1], [], []>} : vector<8x8xf32>, vector<8x128xf32>, vector<8x128xf32> -> vector<8x128xf32>
      %c0_13 = arith.constant 0 : index
      %c0_14 = arith.constant 0 : index
      %18 = vector.load %arg12[%c0_13, %c0_14] : memref<8x128xf32, #tpu.memory_space<vmem>>, vector<8x128xf32>
      %c0_15 = arith.constant 0 : index
      %c0_16 = arith.constant 0 : index
      %19 = vector.load %arg5[%c0_15, %c0_16] : memref<1x128xf32, #tpu.memory_space<vmem>>, vector<1x128xf32>
      %20 = vector.broadcast %19 : vector<1x128xf32> to vector<8x128xf32>
      %21 = arith.addf %18, %20 : vector<8x128xf32>
      %22 = arith.addf %21, %17 : vector<8x128xf32>
      %c0_17 = arith.constant 0 : index
      %c0_18 = arith.constant 0 : index
      %23 = vector.load %arg9[%c0_17, %c0_18] : memref<8x128xf32, #tpu.memory_space<vmem>>, vector<8x128xf32>
      tpu.vector_store %arg9[%c0_17, %c0_18], %22 {strides = array<i32>} : memref<8x128xf32, #tpu.memory_space<vmem>>, vector<8x128xf32>,
      %c0_i32_19 = arith.constant 0 : i32
      %24 = arith.cmpi eq, %arg1, %c0_i32_19 : i32
      %25 = arith.extui %24 : i1 to i32
      %c0_i32_20 = arith.constant 0 : i32
      %26 = arith.cmpi ne, %25, %c0_i32_20 : i32
      scf.if %26 {
        %cst_41 = arith.constant -1.000000e+30 : f32
        %60 = vector.broadcast %cst_41 : f32 to vector<8x1xf32>
        %c0_42 = arith.constant 0 : index
        %c0_43 = arith.constant 0 : index
        %61 = vector.load %arg14[%c0_42, %c0_43] : memref<8x1xf32, #tpu.memory_space<vmem>>, vector<8x1xf32>
        tpu.vector_store %arg14[%c0_42, %c0_43], %60 {strides = array<i32>} : memref<8x1xf32, #tpu.memory_space<vmem>>, vector<8x1xf32>,
        %cst_44 = arith.constant 0.000000e+00 : f32
        %62 = vector.broadcast %cst_44 : f32 to vector<8x1xf32>
        %c0_45 = arith.constant 0 : index
        %c0_46 = arith.constant 0 : index
        %63 = vector.load %arg15[%c0_45, %c0_46] : memref<8x1xf32, #tpu.memory_space<vmem>>, vector<8x1xf32>
        tpu.vector_store %arg15[%c0_45, %c0_46], %62 {strides = array<i32>} : memref<8x1xf32, #tpu.memory_space<vmem>>, vector<8x1xf32>,
        %cst_47 = arith.constant 0.000000e+00 : f32
        %64 = vector.broadcast %cst_47 : f32 to vector<8x1xf32>
        %c0_48 = arith.constant 0 : index
        %c0_49 = arith.constant 0 : index
        %65 = vector.load %arg16[%c0_48, %c0_49] : memref<8x1xf32, #tpu.memory_space<vmem>>, vector<8x1xf32>
        tpu.vector_store %arg16[%c0_48, %c0_49], %64 {strides = array<i32>} : memref<8x1xf32, #tpu.memory_space<vmem>>, vector<8x1xf32>,
      } else {
      }
      %c0_21 = arith.constant 0 : index
      %c0_22 = arith.constant 0 : index
      %27 = vector.load %arg8[%c0_21, %c0_22] : memref<8x1xi32, #tpu.memory_space<vmem>>, vector<8x1xi32>
      %28 = tpu.iota {dimensions = array<i32: 1>} : vector<8x128xi32>
      %c0_23 = arith.constant 0 : index
      %c0_24 = arith.constant 0 : index
      %29 = vector.load %arg14[%c0_23, %c0_24] : memref<8x1xf32, #tpu.memory_space<vmem>>, vector<8x1xf32>
      %cst_25 = arith.constant dense<0xFF800000> : vector<8xf32>
      %30 = vector.multi_reduction <maximumf>, %22, %cst_25 [1] : vector<8x128xf32> to vector<8xf32>
      %31 = vector.shape_cast %30 : vector<8xf32> to vector<8x1xf32>
      %32 = arith.maximumf %29, %31 : vector<8x1xf32>
      %33 = arith.subf %29, %32 : vector<8x1xf32>
      %34 = math.exp %33 : vector<8x1xf32>
      %c0_26 = arith.constant 0 : index
      %c0_27 = arith.constant 0 : index
      %35 = vector.load %arg15[%c0_26, %c0_27] : memref<8x1xf32, #tpu.memory_space<vmem>>, vector<8x1xf32>
      %36 = arith.mulf %34, %35 : vector<8x1xf32>
      %37 = vector.broadcast %32 : vector<8x1xf32> to vector<8x128xf32>
      %38 = arith.subf %22, %37 : vector<8x128xf32>
      %39 = math.exp %38 : vector<8x128xf32>
      %cst_28 = arith.constant dense<0.000000e+00> : vector<8xf32>
      %40 = vector.multi_reduction <add>, %39, %cst_28 [1] : vector<8x128xf32> to vector<8xf32>
      %41 = vector.shape_cast %40 : vector<8xf32> to vector<8x1xf32>
      %42 = arith.addf %36, %41 : vector<8x1xf32>
      %c0_29 = arith.constant 0 : index
      %c0_30 = arith.constant 0 : index
      %43 = vector.load %arg15[%c0_29, %c0_30] : memref<8x1xf32, #tpu.memory_space<vmem>>, vector<8x1xf32>
      tpu.vector_store %arg15[%c0_29, %c0_30], %42 {strides = array<i32>} : memref<8x1xf32, #tpu.memory_space<vmem>>, vector<8x1xf32>,
      %c0_31 = arith.constant 0 : index
      %c0_32 = arith.constant 0 : index
      %44 = vector.load %arg16[%c0_31, %c0_32] : memref<8x1xf32, #tpu.memory_space<vmem>>, vector<8x1xf32>
      %c128_i32_33 = arith.constant 128 : i32
      %45 = arith.muli %arg1, %c128_i32_33 : i32
      %46 = vector.broadcast %45 : i32 to vector<8x1xi32>
      %47 = arith.subi %27, %46 : vector<8x1xi32>
      %48 = vector.broadcast %47 : vector<8x1xi32> to vector<8x128xi32>
      %49 = arith.cmpi eq, %28, %48 : vector<8x128xi32>
      %cst_34 = arith.constant 0.000000e+00 : f32
      %50 = vector.broadcast %cst_34 : f32 to vector<8x128xf32>
      %51 = arith.select %49, %22, %50 : vector<8x128xi1>, vector<8x128xf32>
      %cst_35 = arith.constant dense<0.000000e+00> : vector<8xf32>
      %52 = vector.multi_reduction <add>, %51, %cst_35 [1] : vector<8x128xf32> to vector<8xf32>
      %53 = vector.shape_cast %52 : vector<8xf32> to vector<8x1xf32>
      %54 = arith.addf %44, %53 : vector<8x1xf32>
      %c0_36 = arith.constant 0 : index
      %c0_37 = arith.constant 0 : index
      %55 = vector.load %arg16[%c0_36, %c0_37] : memref<8x1xf32, #tpu.memory_space<vmem>>, vector<8x1xf32>
      tpu.vector_store %arg16[%c0_36, %c0_37], %54 {strides = array<i32>} : memref<8x1xf32, #tpu.memory_space<vmem>>, vector<8x1xf32>,
      %c0_38 = arith.constant 0 : index
      %c0_39 = arith.constant 0 : index
      %56 = vector.load %arg14[%c0_38, %c0_39] : memref<8x1xf32, #tpu.memory_space<vmem>>, vector<8x1xf32>
      tpu.vector_store %arg14[%c0_38, %c0_39], %32 {strides = array<i32>} : memref<8x1xf32, #tpu.memory_space<vmem>>, vector<8x1xf32>,
      %c2_i32 = arith.constant 2 : i32
      %57 = arith.cmpi eq, %arg1, %c2_i32 : i32
      %58 = arith.extui %57 : i1 to i32
      %c0_i32_40 = arith.constant 0 : i32
      %59 = arith.cmpi ne, %58, %c0_i32_40 : i32
      scf.if %59 {
        %c3_i32 = arith.constant 3 : i32
        %60 = vector.broadcast %c3_i32 : i32 to vector<8x1xi32>
        %61 = arith.cmpi ne, %27, %60 : vector<8x1xi32>
        %c0_41 = arith.constant 0 : index
        %c0_42 = arith.constant 0 : index
        %62 = vector.load %arg14[%c0_41, %c0_42] : memref<8x1xf32, #tpu.memory_space<vmem>>, vector<8x1xf32>
        %c0_43 = arith.constant 0 : index
        %c0_44 = arith.constant 0 : index
        %63 = vector.load %arg15[%c0_43, %c0_44] : memref<8x1xf32, #tpu.memory_space<vmem>>, vector<8x1xf32>
        %64 = math.log %63 : vector<8x1xf32>
        %65 = arith.addf %62, %64 : vector<8x1xf32>
        %c0_45 = arith.constant 0 : index
        %c0_46 = arith.constant 0 : index
        %66 = vector.load %arg16[%c0_45, %c0_46] : memref<8x1xf32, #tpu.memory_space<vmem>>, vector<8x1xf32>
        %67 = arith.subf %65, %66 : vector<8x1xf32>
        %cst_47 = arith.constant 0.000000e+00 : f32
        %68 = vector.broadcast %cst_47 : f32 to vector<8x1xf32>
        %69 = arith.select %61, %67, %68 : vector<8x1xi1>, vector<8x1xf32>
        %c0_48 = arith.constant 0 : index
        %c0_49 = arith.constant 0 : index
        %70 = vector.load %arg10[%c0_48, %c0_49] : memref<8x1xf32, #tpu.memory_space<vmem>>, vector<8x1xf32>
        tpu.vector_store %arg10[%c0_48, %c0_49], %69 {strides = array<i32>} : memref<8x1xf32, #tpu.memory_space<vmem>>, vector<8x1xf32>,
        %71 = arith.extui %61 : vector<8x1xi1> to vector<8x1xi32>
        %72 = arith.sitofp %71 : vector<8x1xi32> to vector<8x1xf32>
        %c0_50 = arith.constant 0 : index
        %c0_51 = arith.constant 0 : index
        %73 = vector.load %arg11[%c0_50, %c0_51] : memref<8x1xf32, #tpu.memory_space<vmem>>, vector<8x1xf32>
        tpu.vector_store %arg11[%c0_50, %c0_51], %72 {strides = array<i32>} : memref<8x1xf32, #tpu.memory_space<vmem>>, vector<8x1xf32>,
      } else {
      }
    } else {
    }
    return
  }
  func.func @transform_0(%arg0: i32, %arg1: i32, %arg2: i32) -> (i32, i32) {
    %c0_i32 = arith.constant 0 : i32
    %c0_i32_0 = arith.constant 0 : i32
    return %arg0, %c0_i32 : i32, i32
  }
  func.func @transform_1(%arg0: i32, %arg1: i32, %arg2: i32) -> (i32, i32) {
    %c0_i32 = arith.constant 0 : i32
    return %arg2, %arg1 : i32, i32
  }
  func.func @transform_2(%arg0: i32, %arg1: i32, %arg2: i32) -> (i32, i32) {
    %c0_i32 = arith.constant 0 : i32
    %c0_i32_0 = arith.constant 0 : i32
    return %c0_i32, %arg1 : i32, i32
  }
  func.func @transform_3(%arg0: i32, %arg1: i32, %arg2: i32) -> (i32, i32) {
    %c0_i32 = arith.constant 0 : i32
    %c0_i32_0 = arith.constant 0 : i32
    %c0_i32_1 = arith.constant 0 : i32
    return %c0_i32, %c0_i32_0 : i32, i32
  }
  func.func @transform_4(%arg0: i32, %arg1: i32, %arg2: i32) -> (i32, i32) {
    %c0_i32 = arith.constant 0 : i32
    %c0_i32_0 = arith.constant 0 : i32
    return %c0_i32, %arg1 : i32, i32
  }
  func.func @transform_5(%arg0: i32, %arg1: i32, %arg2: i32) -> (i32, i32) {
    %c0_i32 = arith.constant 0 : i32
    %c0_i32_0 = arith.constant 0 : i32
    return %arg0, %c0_i32 : i32, i32
  }
  func.func @transform_6(%arg0: i32, %arg1: i32, %arg2: i32) -> (i32, i32) {
    %c0_i32 = arith.constant 0 : i32
    return %arg0, %arg1 : i32, i32
  }
  func.func @transform_7(%arg0: i32, %arg1: i32, %arg2: i32) -> (i32, i32) {
    %c0_i32 = arith.constant 0 : i32
    %c0_i32_0 = arith.constant 0 : i32
    return %arg0, %c0_i32 : i32, i32
  }
  func.func @transform_8(%arg0: i32, %arg1: i32, %arg2: i32) -> (i32, i32) {
    %c0_i32 = arith.constant 0 : i32
    %c0_i32_0 = arith.constant 0 : i32
    return %arg0, %c0_i32 : i32, i32
  }
}

</mosaic_0001>

<bundles_post_ra>
// kernel: fwd.1
= control target key start
LH: loop header
LB: loop body
LE: loop exit
PB: predicated region body
PF: predicated region fallthrough
CT: control target
= control target key end

     0   :  { %s1750_s0 = inlined_call_operand.vmem [shape: f32[16,256], index: 0, kind: input, shape index: {}]   ;;  %s1751_s1 = inlined_call_operand.hbm [shape: f32[256,384], index: 1, kind: input, shape index: {}]   ;;  %s1752_s2 = inlined_call_operand.vmem [shape: f32[1,384], index: 2, kind: input, shape index: {}]   ;;  %s1753_s3 = inlined_call_operand.vmem [shape: f32[256,8], index: 3, kind: input, shape index: {}]   ;;  %s1754_s4 = inlined_call_operand.vmem [shape: f32[8,384], index: 4, kind: input, shape index: {}]   ;;  %s1755_s5 = inlined_call_operand.vmem [shape: s32[16,1], index: 5, kind: input, shape index: {}]   ;;  %s1756_s6 = inlined_call_operand.vmem [shape: f32[16,384], index: 6, kind: output, shape index: {0}]   ;;  %s1757_s7 = inlined_call_operand.vmem [shape: f32[16,1], index: 7, kind: output, shape index: {1}]   ;;  %s1758_s8 = inlined_call_operand.vmem [shape: f32[16,1], index: 8, kind: output, shape index: {2}]  }
   0x1   :  { %1768 = sst [smem:[#allocation20_spill]] %s1750_s0 }
   0x2   :  { %1769 = sst [smem:[#allocation21_spill]] %s1751_s1 }
   0x3   :  { %1770 = sst [smem:[#allocation22_spill]] %s1753_s3 }
   0x4   :  { %14 = vsyncpa [#allocation8], 0 }
   0x5   :  { %16 = vsyncpa [#allocation8 + $0x1], 0  ;;  %s1420_s27 = smov 0   ;;  %s1422_s28 = smov 0  }
   0x6   :  { %s1424_s29 = smov 0   ;;  %s1426_s30 = smov 0  }
   0x7   :  { %s1428_s9 = smov 0   ;;  %s1430_s10 = smov 0  }
   0x8   :  { %s1432_s11 = smov 0   ;;  %s1434_s12 = smov 0  }
   0x9   :  { %s1436_s13 = smov 0   ;;  %s1438_s14 = smov 0  }
   0xa LB: > { %1771 = sst [smem:[#allocation10_spill]] %s1328_s28  ;;  %s1017_s15 = sadd.s32 4294967295, %s1360_s14   ;;  %s1360_s14 = sphi %s1438_s14, %s22_s14   ;;  %s1356_s13 = sphi %s1436_s13, %s1798_s13   ;;  %s1352_s12 = sphi %s1434_s12, %s1797_s12   ;;  %s1348_s11 = sphi %s1432_s11, %s1796_s11   ;;  %s1344_s10 = sphi %s1430_s10, %s1795_s10   ;;  %s1340_s9 = sphi %s1428_s9, %s1794_s9   ;;  %s1336_s30 = sphi %s1426_s30, %s1793_s30   ;;  %s1332_s29 = sphi %s1424_s29, %s1792_s29   ;;  %s1328_s28 = sphi %s1422_s28, %s1791_s28   ;;  %s1324_s27 = sphi %s1420_s27, %s1790_s27  }
   0xb   : > { %1772 = sst [smem:[#allocation11_spill]] %s1332_s29  ;;  %s34_s16 = sadd.s32 1, %s1348_s11 }
   0xc   : > { %1773 = sst [smem:[#allocation12_spill]] %s1336_s30  ;;  %p35_p0 = scmp.ge.s32.totalorder %s34_s16, 2 }
   0xd   : > { %1774 = sst [smem:[#allocation13_spill]] %s1348_s11  ;;  %s37_s17 = sadd.s32 1, %s1352_s12 }
   0xe   : > { %1775 = sst [smem:[#allocation14_spill]] %s1352_s12  ;;  %s41_s18 = sadd.s32 1, %s1356_s13 }
   0xf   : > { %1776 = sst [smem:[#allocation15_spill]] %s1356_s13  ;;  %s76_s19 = sadd.s32 1, %s1332_s29 }
  0x10   : > { %s1800_s16 = smov (%p35_p0, %s34_s16), 0  ;;  %s1802_s17 = smov (!%p35_p0, %s37_s17), %s1352_s12 }
  0x11   : > { %1777 = sst [smem:[#allocation16_spill]] %s1800_s16  ;;  %s71_s20 = ssub.s32 %s1348_s11, %s1800_s16 }
  0x12   : > { %p83_p1 = scmp.ne.s32.totalorder %s1332_s29, %s1328_s28  ;;  %p39_p2 = scmp.ge.s32.totalorder %s1802_s17, 3 }
  0x13   : > { %p84_p3 = scmp.eq.s32.totalorder %s1360_s14, 0  ;;  %p89_p4 = scmp.ne.s32.totalorder %s1328_s28, %s1324_s27 }
  0x14   : > { %p90_p5 = scmp.eq.s32.totalorder %s1017_s15, 0  ;;  %s1804_s17 = smov (%p39_p2, %s1802_s17), 0 }
  0x15   : > { %1778 = sst [smem:[#allocation17_spill]] %s1804_s17  ;;  %s1806_s18 = smov (!%p39_p2, %s41_s18), %s1356_s13 }
  0x16   : > { %s72_s21 = ssub.s32 %s1352_s12, %s1804_s17  ;;  %p1490_p6 = por %p84_p3, %p83_p1 }
  0x17   : > { %p43_p7 = scmp.ge.s32.totalorder %s1806_s18, 2  ;;  %s73_s23 = sor.u32 %s72_s21, %s71_s20 }
  0x18   : > { %p74_p8 = scmp.eq.s32.totalorder %s73_s23, 0  ;;  %p1494_p9 = por %p90_p5, %p89_p4 }
  0x19   : > { %s1808_s18 = smov (%p43_p7, %s1806_s18), 0  ;;  %p1149_p10 = scmp.lt.s32.totalorder %s1360_s14, 12 }
  0x1a   : > { %1781 = sst [smem:[#allocation18_spill]] %s1808_s18  ;;  %s303_s26 = sand.u32 1, %s1332_s29  }
  0x1b   : > { %s1501_s25 = scalar_select %p74_p8, %s1332_s29, %s76_s19  }
  0x1c   : > { %s1141_s27 = smul.u32 48, %s1348_s11  ;;  %s1021_s15 = sshll.u32 %s303_s26, 7 }
  0x1d   : > { %1782 = sst [smem:[#allocation19_spill]] %s1501_s25  ;;  %s307_s13 = scalar_lea.vmem [#allocation7], %s1021_s15 }
  0x1e   : > { %s313_s17 = sadd.s32 %s1352_s12, %s1141_s27  ;;  %s316_s3 = sshll.u32 %s307_s13, 4  ;;  %s317_s3 = int_to_ptr.vmem [resolvable:$true] %s316_s3 }
  0x1f   : > { %s1024_s16 = sshll.u32 %s313_s17, 7  ;;  %s1783_s1 = sld [smem:[#allocation21_spill]] }
  0x20   : > { %p1512_p11 = pnand %p1149_p10, %p1490_p6  ;;  %p1025_p12 = scmp.ge.s32.totalorder %s1360_s14, 1 }
  0x21   : > { %s304_s19 = scalar_lea.sflag [#allocation8], %s303_s26  ;;  %s1263_s18 = scalar_lea.vmem %s317_s3, 2048 }
  0x22   : > { %p1252_p13 = pneg %p1512_p11  ;;  %p1264_p0 = scmp.ne.s32.totalorder %s317_s3, %s1263_s18 }
  0x23   : > { %s1362_s13 = smov [#allocation7]  }
  0x24   : > { %p1266_p1 = pnand %p1264_p0, %p1252_p13  ;;  %s1268_s17 = sshll.u32 %s1362_s13, 4  ;;  %s1269_s17 = int_to_ptr.vmem [resolvable:$false] %s1268_s17 }
  0x25   : > { %s315_s21 = scalar_lea.hbm %s1783_s1, %s1024_s16  ;;  %s1270_s30 = scalar_lea.vmem %s1269_s17, 4096 }
  0x26   : > { %p1267_p2 = pneg %p1266_p1  ;;  %p1271_p3 = scmp.lt.s32.totalorder %s317_s3, %s1269_s17 }
  0x27   : > { %p1272_p4 = scmp.lt.s32.totalorder %s1270_s30, %s1263_s18 }
  0x29   : > { %p1273_p5 = por %p1272_p4, %p1271_p3 }
  0x2b   : > { %p1274_p6 = pnand %p1273_p5, %p1267_p2 }
  0x2d   : > { %1277 = shalt.err (!%p1274_p6)
}
  0x2e   : > { %s1363_s16 = smov 384   ;;  %s1364_s22 = smov 128  }
  0x2f   : > { %s1365_s26 = smov 8   ;;  %p344_p7 = scmp.lt.s32.totalorder %s1360_s14, 13 }
  0x30   : > { %1148 = dma.hbm_to_vmem [thread:$0]  (!%p1512_p11), %s315_s21, 2048, %s317_s3, %s304_s19, %s1363_s16, %s1364_s22, %s1365_s26  }
  0x31   : > { %p345_p8 = pnand %p1025_p12, %p344_p7 }
  0x32   : > { %s350_s27 = sand.u32 (!%p345_p8), 1, %s1328_s28  }
  0x33   : > { %348 = sbr.rel (%p345_p8) target bundleno = 1187 (0x4a3), region = 44  ;;  %s1026_s15 = sshll.u32 (!%p345_p8), %s350_s27, 7 }
  0x34   : > { %s351_s18 = scalar_lea.sflag (!%p345_p8), [#allocation8], %s350_s27  ;;  %s1525_s20 = scalar_lea.vmem (!%p345_p8), [#allocation7], %s1026_s15 }
  0x38   : > { %1319 = dma.done.wait (%p1494_p9), %s351_s18, 2048  }
  0x39   : > { %1321 = vsyncadd (%p1494_p9), %s351_s18, 4294965248  ;;  %p414_p10 = scmp.lt.s32.totalorder %s1344_s10, 1  ;;  %p420_p11 = scmp.lt.s32.totalorder %s1340_s9, 2 }
  0x3a   : > { %s1785_s0 = sld [smem:[#allocation20_spill]] }
  0x3b   : > { %s1810_s10 = smov (!%p414_p10, %s1344_s10), 1  ;;  %s1786_s27 = sld [smem:[#allocation12_spill]] }
  0x3c   : > { %s1535_s3 = scalar_select %p420_p11, %s1340_s9, 2 }
  0x3d   : > { %s1046_s21 = sshll.u32 %s1810_s10, 4  ;;  %s1537_s23 = sshll.u32 %s1810_s10, 3 }
  0x3e   : > { %s1029_s22 = sshll.u32 %s1535_s3, 3  ;;  %s430_s15 = scalar_lea.vmem %s1755_s5, %s1537_s23 }
  0x3f   : > { %s1556_s12 = scalar_lea.vmem %s1754_s4, %s1029_s22  ;;  %s1142_s19 = smul.u32 3, %s1810_s10 }
  0x40   : > { %s1542_s24 = scalar_lea.vmem %s1785_s0, %s1046_s21  ;;  %s442_s21 = scalar_lea.vmem %s1757_s7, %s1537_s23 }
  0x41   : > { %s446_s17 = scalar_lea.vmem %s1758_s8, %s1537_s23  ;;  %s436_s30 = sadd.s32 %s1142_s19, %s1535_s3 }
  0x42   : > { %s1031_s16 = sshll.u32 %s436_s30, 3  ;;  %p1034_p9 = scmp.ne.s32.totalorder %s1786_s27, 0 }
  0x43   : > { %s1570_s26 = scalar_lea.vmem %s1756_s6, %s1031_s16  ;;  %s1787_s22 = sld [smem:[#allocation22_spill]] (!%p1034_p9) }
  0x44   : > { %450 = sbr.rel (%p1034_p9) target bundleno = 304 (0x130), region = 52 }
  0x49   : > { %v485_v0 = vld [vmem:[%s1787_s22 + $0xf8] sm:$0xff]  ;;  %v484_v2 = vld [vmem:[%s1787_s22 + $0xf0] sm:$0xff]  ;;  %v1366_v3 = vmov 0.0   ;;  %v483_v5 = vld [vmem:[%s1787_s22 + $0xe8] sm:$0xff]  ;;  %vm556_vm0 = vcmask 64512  }
  0x4a   : > { %v469_v1 = vld [vmem:[%s1787_s22 + $0x78] sm:$0xff]  ;;  %451 = vst [vmem:[#allocation2] sm:$0xff] %v1366_v3  ;;  %1047 = vmatprep.subr.mxu0 %v485_v0  ;;  %v468_v4 = vld [vmem:[%s1787_s22 + $0x70] sm:$0xff]  ;;  %v467_v6 = vld [vmem:[%s1787_s22 + $0x68] sm:$0xff] }
  0x4b   : > { %1048 = vmatpush3.msra.mxu0 %v469_v1  ;;  %v482_v7 = vld [vmem:[%s1787_s22 + $0xe0] sm:$0xff]  ;;  %v481_v9 = vld [vmem:[%s1787_s22 + $0xd8] sm:$0xff]  ;;  %v480_v11 = vld [vmem:[%s1787_s22 + $0xd0] sm:$0xff] }
  0x4c   : > { %1049 = vmatprep.subr.mxu0 %v484_v2  ;;  %v466_v8 = vld [vmem:[%s1787_s22 + $0x60] sm:$0xff]  ;;  %v465_v10 = vld [vmem:[%s1787_s22 + $0x58] sm:$0xff]  ;;  %v464_v12 = vld [vmem:[%s1787_s22 + $0x50] sm:$0xff] }
  0x4d   : > { %1050 = vmatpush3.msra.mxu0 %v468_v4  ;;  %v479_v13 = vld [vmem:[%s1787_s22 + $0xc8] sm:$0xff]  ;;  %v478_v16 = vld [vmem:[%s1787_s22 + $0xc0] sm:$0xff]  ;;  %v477_v18 = vld [vmem:[%s1787_s22 + $0xb8] sm:$0xff] }
  0x4e   : > { %1051 = vmatprep.subr.mxu0 %v483_v5  ;;  %v453_v14 = vld [vmem:[%s1542_s24 + $0x8] sm:$0xff]  ;;  %v462_v17 = vld [vmem:[%s1787_s22 + $0x40] sm:$0xff]  ;;  %v461_v19 = vld [vmem:[%s1787_s22 + $0x38] sm:$0xff] }
  0x4f   : > { %1052 = vmatpush3.msra.mxu0 %v467_v6  ;;  %v463_v15 = vld [vmem:[%s1787_s22 + $0x48] sm:$0xff]  ;;  %550 = vmatprep.mubr.f32.mxu0 %v453_v14  ;;  %v476_v20 = vld [vmem:[%s1787_s22 + $0xb0] sm:$0xff]  ;;  %v474_v24 = vld [vmem:[%s1787_s22 + $0xa0] sm:$0xff] }
  0x50   : > { %1053 = vmatprep.subr.mxu0 %v482_v7  ;;  %v460_v21 = vld [vmem:[%s1787_s22 + $0x30] sm:$0xff]  ;;  %v475_v22 = vld [vmem:[%s1787_s22 + $0xa8] sm:$0xff]  ;;  %v458_v25 = vld [vmem:[%s1787_s22 + $0x20] sm:$0xff] }
  0x51   : > { %1054 = vmatpush3.msra.mxu0 %v466_v8  ;;  %v459_v23 = vld [vmem:[%s1787_s22 + $0x28] sm:$0xff]  ;;  %v473_v26 = vld [vmem:[%s1787_s22 + $0x98] sm:$0xff]  ;;  %v472_v28 = vld [vmem:[%s1787_s22 + $0x90] sm:$0xff] }
  0x52   : > { %1055 = vmatprep.subr.mxu0 %v481_v9  ;;  %v457_v27 = vld [vmem:[%s1787_s22 + $0x18] sm:$0xff]  ;;  %v456_v29 = vld [vmem:[%s1787_s22 + $0x10] sm:$0xff]  ;;  %v471_v30 = vld [vmem:[%s1787_s22 + $0x88] sm:$0xff] }
  0x53   : > { %1056 = vmatpush3.msra.mxu0 %v465_v10  ;;  %v455_v31 = vld [vmem:[%s1787_s22 + $0x8] sm:$0xff]  ;;  %v470_v32 = vld [vmem:[%s1787_s22 + $0x80] sm:$0xff] }
  0x54   : > { %1057 = vmatprep.subr.mxu0 %v480_v11  ;;  %v454_v33 = vld [vmem:[%s1787_s22] sm:$0xff] }
  0x55   : > { %1058 = vmatpush3.msra.mxu0 %v464_v12  ;;  %v452_v34 = vld [vmem:[%s1542_s24] sm:$0xff] }
  0x56   : > { %1059 = vmatprep.subr.mxu0 %v479_v13 }
  0x57   : > { %1060 = vmatpush3.msra.mxu0 %v463_v15 }
  0x58   : > { %1061 = vmatprep.subr.mxu0 %v478_v16 }
  0x59   : > { %1062 = vmatpush3.msra.mxu0 %v462_v17 }
  0x5a   : > { %1063 = vmatprep.subr.mxu0 %v477_v18 }
  0x5b   : > { %1064 = vmatpush3.msra.mxu0 %v461_v19 }
  0x5c   : > { %1065 = vmatprep.subr.mxu0 %v476_v20 }
  0x5d   : > { %1066 = vmatpush3.msra.mxu0 %v460_v21 }
  0x5e   : > { %1067 = vmatprep.subr.mxu0 %v475_v22 }
  0x5f   : > { %1068 = vmatpush3.msra.mxu0 %v459_v23 }
  0x60   : > { %1069 = vmatprep.subr.mxu0 %v474_v24 }
  0x61   : > { %1070 = vmatpush3.msra.mxu0 %v458_v25 }
  0x62   : > { %1071 = vmatprep.subr.mxu0 %v473_v26 }
  0x63   : > { %1072 = vmatpush3.msra.mxu0 %v457_v27 }
  0x64   : > { %1073 = vmatprep.subr.mxu0 %v472_v28 }
  0x65   : > { %1074 = vmatpush3.msra.mxu0 %v456_v29 }
  0x66   : > { %1075 = vmatprep.subr.mxu0 %v471_v30 }
  0x67   : > { %1076 = vmatpush3.msra.mxu0 %v455_v31 }
  0x68   : > { %1077 = vmatprep.subr.mxu0 %v470_v32 }
  0x69   : > { %1078 = vmatpush3.msra.mxu0 %v454_v33 }
  0x6a   : > { %551 = vmatmul.mubr.f32.vlgmr.msra.gmra.mxu0 %v452_v34 }
 0x12a   : > { %v1079_v35 = vpop.f32.mrf.mxu0 }
 0x12c   : > { %v1080_v36 = vpop.f32.mrf.mxu0 }
 0x12d   : > { %v1081_v37 = vadd.f32 %v1080_v36, %v1079_v35 }
 0x12f   : > { %557 = vst.msk [vmem:[#allocation3] sm:$0xff] %vm556_vm0, %v1081_v37 }
 0x130 PF: > { %v580_v38 = vld [vmem:[%s1525_s20 + $0x78] sm:$0xff]  ;;  %v1367_v39 = vmov 0.0   ;;  %v579_v40 = vld [vmem:[%s1525_s20 + $0x70] sm:$0xff]  ;;  %vm1368_vm1 = vmmov 0   ;;  %v578_v41 = vld [vmem:[%s1525_s20 + $0x68] sm:$0xff]  ;;  %s1788_s27 = sld [smem:[#allocation12_spill]] }
 0x131   : > { %1101 = vmatprep.subr.mxu0 %v1367_v39  ;;  %1133 = vmatprep.mubr.msk.f32.mxu0 %vm1368_vm1, %v1367_v39  ;;  %v577_v42 = vld [vmem:[%s1525_s20 + $0x60] sm:$0xff]  ;;  %v576_v43 = vld [vmem:[%s1525_s20 + $0x58] sm:$0xff]  ;;  %v575_v44 = vld [vmem:[%s1525_s20 + $0x50] sm:$0xff] }
 0x132   : > { %1102 = vmatpush3.msra.mxu0 %v580_v38  ;;  %v574_v45 = vld [vmem:[%s1525_s20 + $0x48] sm:$0xff]  ;;  %v573_v46 = vld [vmem:[%s1525_s20 + $0x40] sm:$0xff]  ;;  %v572_v47 = vld [vmem:[%s1525_s20 + $0x38] sm:$0xff] }
 0x133   : > { %1103 = vmatprep.subr.mxu0 %v1367_v39  ;;  %v571_v48 = vld [vmem:[%s1525_s20 + $0x30] sm:$0xff]  ;;  %v570_v49 = vld [vmem:[%s1525_s20 + $0x28] sm:$0xff]  ;;  %v569_v50 = vld [vmem:[%s1525_s20 + $0x20] sm:$0xff] }
 0x134   : > { %1104 = vmatpush3.msra.mxu0 %v579_v40  ;;  %v568_v51 = vld [vmem:[%s1525_s20 + $0x18] sm:$0xff]  ;;  %v567_v52 = vld [vmem:[%s1525_s20 + $0x10] sm:$0xff]  ;;  %v566_v53 = vld [vmem:[%s1525_s20 + $0x8] sm:$0xff] }
 0x135   : > { %1105 = vmatprep.subr.mxu0 %v1367_v39  ;;  %v565_v54 = vld [vmem:[%s1525_s20] sm:$0xff]  ;;  %v559_v56 = vld [vmem:[#allocation2] sm:$0xff] }
 0x136   : > { %1106 = vmatpush3.msra.mxu0 %v578_v41  ;;  %s1035_s1 = sshll.u32 %s1788_s27, 7  ;;  %p1037_p12 = scmp.ne.s32.totalorder %s1788_s27, 1 }
 0x137   : > { %1107 = vmatprep.subr.mxu0 %v1367_v39  ;;  %s560_s10 = sshra.s32 %s1035_s1, 7  ;;  %s1789_s0 = scalar_lea.vmem (!%p1037_p12), %s1752_s2, %s1535_s3 }
 0x138   : > { %1108 = vmatpush3.msra.mxu0 %v577_v42  ;;  %s1036_s11 = sshll.u32 %s560_s10, 3  ;;  %p1040_p13 = scmp.ne.s32.totalorder (!%p1037_p12), %s1340_s9, 0 }
 0x139   : > { %1109 = vmatprep.subr.mxu0 %v1367_v39  ;;  %s563_s18 = scalar_lea.vmem %s1542_s24, %s1036_s11 }
 0x13a   : > { %1110 = vmatpush3.msra.mxu0 %v576_v43  ;;  %v564_v55 = vld [vmem:[%s563_s18] sm:$0xff] }
 0x13b   : > { %1111 = vmatprep.subr.mxu0 %v1367_v39 }
 0x13c   : > { %1112 = vmatpush3.msra.mxu0 %v575_v44 }
 0x13d   : > { %1113 = vmatprep.subr.mxu0 %v1367_v39 }
 0x13e   : > { %1114 = vmatpush3.msra.mxu0 %v574_v45 }
 0x13f   : > { %1115 = vmatprep.subr.mxu0 %v1367_v39 }
 0x140   : > { %1116 = vmatpush3.msra.mxu0 %v573_v46 }
 0x141   : > { %1117 = vmatprep.subr.mxu0 %v1367_v39 }
 0x142   : > { %1118 = vmatpush3.msra.mxu0 %v572_v47 }
 0x143   : > { %1119 = vmatprep.subr.mxu0 %v1367_v39 }
 0x144   : > { %1120 = vmatpush3.msra.mxu0 %v571_v48 }
 0x145   : > { %1121 = vmatprep.subr.mxu0 %v1367_v39 }
 0x146   : > { %1122 = vmatpush3.msra.mxu0 %v570_v49 }
 0x147   : > { %1123 = vmatprep.subr.mxu0 %v1367_v39 }
 0x148   : > { %1124 = vmatpush3.msra.mxu0 %v569_v50 }
 0x149   : > { %1125 = vmatprep.subr.mxu0 %v1367_v39 }
 0x14a   : > { %1126 = vmatpush3.msra.mxu0 %v568_v51 }
 0x14b   : > { %1127 = vmatprep.subr.mxu0 %v1367_v39 }
 0x14c   : > { %1128 = vmatpush3.msra.mxu0 %v567_v52 }
 0x14d   : > { %1129 = vmatprep.subr.mxu0 %v1367_v39 }
 0x14e   : > { %1130 = vmatpush3.msra.mxu0 %v566_v53 }
 0x14f   : > { %1131 = vmatprep.subr.mxu0 %v1367_v39 }
 0x150   : > { %1132 = vmatpush3.msra.mxu0 %v565_v54 }
 0x151   : > { %1134 = vmatmul.mubr.f32.vlgmr.msra.gmra.mxu0 %v564_v55 }
 0x210   : > { %656 = sbr.rel (%p1037_p12) target bundleno = 1187 (0x4a3), region = 56 }
 0x211   : > { %v647_v57 = vpop.f32.mrf.mxu0 }
 0x212   : > { %v651_v58 = vadd.f32 %v647_v57, %v559_v56 }
 0x213   : > { %v1135_v59 = vpop.f32.mrf.mxu0 }
 0x214   : > { %652 = vst [vmem:[#allocation2] sm:$0xff] %v651_v58 }
 0x215   : > { %v658_v60 = vld [vmem:[%s1556_s12] sm:$0xff]  ;;  %v657_v61 = vld [vmem:[#allocation3] sm:$0xff]  ;;  %vm659_vm2 = vcmask 64512   ;;  %v1369_v62 = vmov 0.0   ;;  %vm1370_vm3 = vmmov 0  }
 0x216   : > { %1136 = vmatprep.subr.mxu0 %v1369_v62  ;;  %1138 = vmatprep.mubr.msk.f32.mxu0 %vm1370_vm3, %v1369_v62  ;;  %v1039_v0 = vld [vmem:[%s1789_s0] ss:$0 sm:$0xff] }
 0x217   : > { %1137 = vmatpush3.msra.mxu0 %v658_v60 }
 0x218   : > { %1139 = vmatmul.mubr.msk.f32.vlgmr.msra.gmra.mxu0 %vm659_vm2, %v657_v61 }
 0x21b   : > { %v733_v63 = vld [vmem:[#allocation2] sm:$0xff] }
 0x21c   : > { %v741_v1 = vadd.f32 %v1039_v0, %v733_v63 }
 0x2d7   : > { %747 = sbr.rel (%p1040_p13) target bundleno = 735 (0x2df), region = 60 }
 0x2d8   : > { %v729_v2 = vpop.f32.mrf.mxu0 }
 0x2d9   : > { %v742_v3 = vadd.f32 %v741_v1, %v729_v2 }
 0x2da   : > { %v1140_v4 = vpop.f32.mrf.mxu0 }
 0x2db   : > { %743 = vst [vmem:[%s1570_s26] sm:$0xff] %v742_v3 }
 0x2dc   : > { %vm748_vm4 = vcmask 7168   ;;  %v1371_v5 = vmov -1e+30   ;;  %v1372_v6 = vmov 0.0  }
 0x2dd   : > { %749 = vst.msk [vmem:[#allocation4] sm:$0xff] %vm748_vm4, %v1371_v5  ;;  %750 = vst.msk [vmem:[#allocation5] sm:$0xff] %vm748_vm4, %v1372_v6 }
 0x2de   : > { %751 = vst.msk [vmem:[#allocation6] sm:$0xff] %vm748_vm4, %v1372_v6 }
 0x2df PF: > { %756 = vmax.xlane.f32.xlu0 %v742_v3  ;;  %v1373_v7 = vmov 0   ;;  %v752_v8 = vld [vmem:[%s430_s15] sm:$0xff]  ;;  %s1041_s26 = sshll.u32 %s1340_s9, 7  ;;  %vm775_vm5 = vcmask 7168   ;;  %v753_v18 = vlaneseq  ;;  %p1042_p0 = scmp.ne.s32.totalorder %s1340_s9, 2 }
 0x2e0   : > { %1242 = vset.pattern.permute.xlu0 %v1373_v7  ;;  %1243 = vset.pattern.permute.xlu1 %v1373_v7  ;;  %v779_v9 = vstv %s1041_s26 }
 0x2e1   : > { %v780_v10 = vsub.s32 %v752_v8, %v779_v9  ;;  %v754_v19 = vand.u32 127, %v753_v18 }
 0x2e3   : > { %782 = vperm.xlu1 %1243, %v780_v10  }
 0x2e4   : > { %v755_v11 = vld [vmem:[#allocation4] sm:$0xff]  ;;  %v762_v25 = vld [vmem:[#allocation5] sm:$0xff] }
 0x2e5   : > { %v777_v29 = vld [vmem:[#allocation6] sm:$0xff] }
 0x35e   : > { %v783_v20 = vpop.permute.xlu1 %782 }
 0x35f   : > { %vm784_vm6 = vcmp.eq.s32.totalorder %v754_v19, %v783_v20 }
 0x360   : > { %v785_v22 = vsel %vm784_vm6, %v742_v3, 0.0 }
 0x368   : > { %v757_v12 = vpop.xlane.xlu0 %756 }
 0x369   : > { %v758_v13 = vmax.f32 %v755_v11, %v757_v12 }
 0x36b   : > { %v759_v14 = vsub.f32 %v755_v11, %v758_v13  ;;  %790 = vst.msk [vmem:[#allocation4] sm:$0xff] %vm775_vm5, %v758_v13  ;;  %766 = vperm.xlu0 %1242, %v758_v13  }
 0x36d   : > { %v760_v23 = vmul.f32 1.442695, %v759_v14 }
 0x3e6   : > { %v767_v15 = vpop.permute.xlu0 %766 }
 0x3e7   : > { %v769_v16 = vsub.f32 %v742_v3, %v767_v15 }
 0x3e9   : > { %v770_v17 = vmul.f32 1.442695, %v769_v16 }
 0x3eb   : > { %1244 = vpow2.f32 %v770_v17 }
 0x3ec   : > { %1246 = vpow2.f32 %v760_v23 }
 0x3f8   : > { %v1245_v21 = vpop.eup %1244 }
 0x3f9   : > { %772 = vadd.xlane.f32.xlu1 %v1245_v21  ;;  %v1247_v24 = vpop.eup %1246 }
 0x3fa   : > { %v763_v26 = vmul.f32 %v1247_v24, %v762_v25 }
 0x3fd   : > { %786 = vadd.xlane.f32.xlu1 %v785_v22 }
 0x482   : > { %v773_v27 = vpop.xlane.xlu1 %772 }
 0x483   : > { %v774_v28 = vadd.f32 %v773_v27, %v763_v26 }
 0x485   : > { %776 = vst.msk [vmem:[#allocation5] sm:$0xff] %vm775_vm5, %v774_v28  ;;  %794 = sbr.rel (%p1042_p0) target bundleno = 1187 (0x4a3), region = 64 }
 0x486   : > { %v787_v30 = vpop.xlane.xlu1 %786 }
 0x487   : > { %v788_v31 = vadd.f32 %v787_v30, %v777_v29 }
 0x489   : > { %789 = vst.msk [vmem:[#allocation6] sm:$0xff] %vm775_vm5, %v788_v31 }
 0x48a   : > { %vm795_vm7 = vcmp.ne.s32.totalorder %v752_v8, 3  ;;  %v1374_v33 = vmov 0.0   ;;  %v796_v36 = vld [vmem:[#allocation4] sm:$0xff] }
 0x48b   : > { %v1043_v34 = vsel %vm795_vm7, 1.0, %v1374_v33 }
 0x48c   : > { %v797_v32 = vld [vmem:[#allocation5] sm:$0xff]  ;;  %807 = vst.msk [vmem:[%s446_s17] sm:$0xff] %vm775_vm5, %v1043_v34 }
 0x48d   : > { %1248 = vlog2.f32 %v797_v32 }
 0x490   : > { %v801_v38 = vld [vmem:[#allocation6] sm:$0xff] }
 0x49a   : > { %v1249_v35 = vpop.eup %1248 }
 0x49b   : > { %v799_v37 = vmul.f32 0.6931472, %v1249_v35 }
 0x49d   : > { %v800_v39 = vadd.f32 %v799_v37, %v796_v36 }
 0x49f   : > { %v802_v40 = vsub.f32 %v800_v39, %v801_v38 }
 0x4a1   : > { %v803_v41 = vsel %vm795_vm7, %v802_v40, 0.0 }
 0x4a2   : > { %804 = vst.msk [vmem:[%s442_s21] sm:$0xff] %vm775_vm5, %v803_v41 }
 0x4a3 PF: > { %s22_s14 = sadd.s32 1, %s1360_s14   ;;  %s1790_s27 = sld [smem:[#allocation10_spill]] }
 0x4a4   : > { %p19_p1 = scmp.ge.s32.totalorder %s22_s14, 14   ;;  %s1791_s28 = sld [smem:[#allocation11_spill]] }
 0x4a5   : > { %s1792_s29 = sld [smem:[#allocation19_spill]] }
 0x4a6   : > { %s1793_s30 = sld [smem:[#allocation13_spill]] }
 0x4a7   : > { %s1794_s9 = sld [smem:[#allocation14_spill]]  ;;  %21 = sbr.rel (!%p19_p1) target bundleno = 10 (0xa), region = 137 }
 0x4a8   : > { %s1795_s10 = sld [smem:[#allocation15_spill]] }
 0x4a9   : > { %s1796_s11 = sld [smem:[#allocation16_spill]] }
 0x4aa   : > { %s1797_s12 = sld [smem:[#allocation17_spill]] }
 0x4ab   : > { %s1798_s13 = sld [smem:[#allocation18_spill]] }
 0x4ac   :  { %863 = vsyncpa [#allocation8], 1 }
 0x4ad   :  { %865 = vsyncpa [#allocation8 + $0x1], 1 }

</bundles_post_ra>
